<compile_context>
chip_gen: v6e
topology: v6e:2x2x1
jax: 0.10.0
libtpu: 0.0.40
codegen_flags: <defaults>
</compile_context>

<pallas_src>
import functools

import jax
import jax.numpy as jnp
from jax.experimental import pallas as pl
from jax.experimental.pallas import tpu as pltpu

LANE = 128
SUBLANE = 8


def _round_up(x, m):
    return ((x + m - 1) // m) * m


def _int_pow(q, g):
    """q ** g for non-negative integer g via repeated multiplies (VPU only)."""
    if g == 0:
        return jnp.ones_like(q)
    result = None
    base = q
    while g:
        if g & 1:
            result = base if result is None else result * base
        g >>= 1
        if g:
            base = base * base
    return result


def _focal(x, t, alpha, gamma, logits, binary_targets=False):
    """Per-element focal loss in f32 (x, t already f32)."""
    if logits:
        # Stable binary_cross_entropy_with_logits: max(x,0) - x*t + log1p(exp(-|x|))
        bce = jnp.maximum(x, 0.0) - x * t + jnp.log1p(jnp.exp(-jnp.abs(x)))
    elif binary_targets:
        # Single-EUP-log fast path; valid only for hard {0, 1} targets.
        p_t = jnp.where(t > 0.5, x, 1.0 - x)
        bce = -jnp.maximum(jnp.log(p_t), -100.0)
    else:
        # binary_cross_entropy with PyTorch's -100 log clamp.
        log_x = jnp.maximum(jnp.log(x), -100.0)
        log_1mx = jnp.maximum(jnp.log(1.0 - x), -100.0)
        bce = -(t * log_x + (1.0 - t) * log_1mx)
    pt = jnp.exp(-bce)
    q = 1.0 - pt
    if float(gamma) == float(int(gamma)) and int(gamma) >= 0:
        qg = _int_pow(q, int(gamma))   # repeated multiplies: VPU only, no EUP pow
    else:
        qg = q ** gamma
    return alpha * qg * bce


def _focal_sum_kernel(x_ref, t_ref, out_ref, *, alpha, gamma, logits,
                      binary_targets, n_full, n_steps, has_phantom):
    s = pl.program_id(1)

    @pl.when(s == 0)
    def _():
        out_ref[...] = jnp.zeros_like(out_ref)

    def accumulate():
        x = x_ref[...].astype(jnp.float32)
        t = t_ref[...].astype(jnp.float32)
        f = _focal(x, t, alpha, gamma, logits, binary_targets)
        tm = f.shape[0]
        m = tm // SUBLANE
        # Split the per-tile sublane reduction into k independent partial chains so
        # the accumulation is not one long dependent VPU add chain.
        k = 8 if m % 8 == 0 else (4 if m % 4 == 0 else (2 if m % 2 == 0 else 1))
        p = f.reshape(k, m // k, SUBLANE, LANE).sum(axis=1)
        out_ref[...] += p.sum(axis=0)

    if has_phantom:
        g = pl.program_id(0)

        @pl.when(g * n_steps + s < n_full)   # skip the single phantom step
        def _():
            accumulate()
    else:
        accumulate()


def _focal_elem_kernel(x_ref, t_ref, o_ref, *, alpha, gamma, logits, binary_targets):
    x = x_ref[...].astype(jnp.float32)
    t = t_ref[...].astype(jnp.float32)
    o_ref[...] = _focal(x, t, alpha, gamma, logits, binary_targets).astype(o_ref.dtype)


def _flatten_2d(inputs, targets, logits):
    """Flatten to a lane-dense (rows, 128) slab (rows a multiple of 8), native dtype.

    Aligned inputs (n % 1024 == 0) are reshaped for free (no HBM copy).  Otherwise
    pad minimally with ZERO-LOSS sentinel values so no in-kernel masking is needed:
      logits=False: x=0, t=0  -> bce = 0 exactly  -> loss 0
      logits=True:  x=-100, t=0 -> q = 0 exactly  -> loss 0
    """
    n = inputs.size
    xf = inputs.reshape(-1)
    tf = targets.reshape(-1)
    chunk = SUBLANE * LANE
    if n % chunk:
        rows = _round_up(-(-n // LANE), SUBLANE)
        pad = rows * LANE - n
        x_sentinel = -100.0 if logits else 0.0
        xf = jnp.pad(xf, (0, pad), constant_values=x_sentinel)
        tf = jnp.pad(tf, (0, pad))
    else:
        rows = n // LANE
    return xf.reshape(rows, LANE), tf.reshape(rows, LANE), rows


def binary_focal_loss(inputs, targets, *, alpha=0.5, gamma=4.0, logits=False,
                      reduce=True, binary_targets=False, block_rows=8192):
    n = int(inputs.size)
    out_dtype = inputs.dtype if jnp.issubdtype(inputs.dtype, jnp.inexact) else jnp.float32
    alpha = float(alpha)
    gamma = float(gamma)
    logits = bool(logits)
    binary_targets = bool(binary_targets)

    x2d, t2d, rows = _flatten_2d(inputs, targets, logits)
    # block_rows (8192) is a multiple of 32 so sub-32-bit input dtypes pack cleanly;
    # when rows < block_rows the block is full-extent, which is always allowed.
    tm = min(int(block_rows), rows)
    in_bytes_per_row = LANE * (x2d.dtype.itemsize + t2d.dtype.itemsize)

    if reduce:
        n_full = rows // tm                # only full tm-row blocks go through the grid
        rem_rows = rows - n_full * tm      # < tm rows; tiny jnp epilogue below
        n_par = 2 if n_full >= 2 else 1    # shard across both TensorCores on v7x
        n_steps = -(-n_full // n_par)
        has_phantom = (n_par * n_steps) != n_full

        if has_phantom:
            def in_map(g, s):
                return (jnp.minimum(g * n_steps + s, n_full - 1), 0)
        else:
            def in_map(g, s):
                return (g * n_steps + s, 0)

        vmem_limit = int(min(128 << 20,
                             max(2 * tm * in_bytes_per_row + (4 << 20), 16 << 20)))
        kernel = functools.partial(
            _focal_sum_kernel, alpha=alpha, gamma=gamma, logits=logits,
            binary_targets=binary_targets, n_full=int(n_full), n_steps=int(n_steps),
            has_phantom=bool(has_phantom))
        partials = pl.pallas_call(
            kernel,
            out_shape=jax.ShapeDtypeStruct((n_par * SUBLANE, LANE), jnp.float32),
            grid_spec=pltpu.PrefetchScalarGridSpec(
                num_scalar_prefetch=0,
                grid=(n_par, n_steps),
                in_specs=[pl.BlockSpec((tm, LANE), in_map),
                          pl.BlockSpec((tm, LANE), in_map)],
                out_specs=pl.BlockSpec((SUBLANE, LANE), lambda g, s: (g, 0)),
            ),
            compiler_params=pltpu.CompilerParams(
                dimension_semantics=("parallel", "arbitrary"),
                vmem_limit_bytes=vmem_limit),
        )(x2d, t2d)

        total = jnp.sum(partials)
        if rem_rows:
            # Remainder (< block_rows*128 elems) handled with plain jnp — negligible
            # next to the bulk pass, avoids ragged blocks / masking in the kernel.
            xt = x2d[n_full * tm:, :].astype(jnp.float32)
            tt = t2d[n_full * tm:, :].astype(jnp.float32)
            total = total + jnp.sum(_focal(xt, tt, alpha, gamma, logits, binary_targets))
        return (total / jnp.float32(n)).astype(out_dtype)

    # reduce=False: elementwise output, emitted in the input dtype.
    n_blocks = -(-rows // tm)
    rows_out = n_blocks * tm   # last input block may read OOB garbage rows; those land
                               # past the valid length and are sliced off below.
    out_bytes_per_row = LANE * jnp.dtype(out_dtype).itemsize
    vmem_limit = int(min(128 << 20,
                         max(2 * tm * (in_bytes_per_row + out_bytes_per_row) + (4 << 20),
                             16 << 20)))
    kernel = functools.partial(_focal_elem_kernel, alpha=alpha, gamma=gamma,
                               logits=logits, binary_targets=binary_targets)
    out2d = pl.pallas_call(
        kernel,
        out_shape=jax.ShapeDtypeStruct((rows_out, LANE), out_dtype),
        grid_spec=pltpu.PrefetchScalarGridSpec(
            num_scalar_prefetch=0,
            grid=(n_blocks,),
            in_specs=[pl.BlockSpec((tm, LANE), lambda i: (i, 0)),
                      pl.BlockSpec((tm, LANE), lambda i: (i, 0))],
            out_specs=pl.BlockSpec((tm, LANE), lambda i: (i, 0)),
        ),
        compiler_params=pltpu.CompilerParams(
            dimension_semantics=("parallel",),
            vmem_limit_bytes=vmem_limit),
    )(x2d, t2d)
    out_flat = out2d.reshape(-1)
    if rows_out * LANE != n:
        out_flat = out_flat[:n]
    return out_flat.reshape(inputs.shape)


def _reference(inputs, targets, alpha=0.5, gamma=4.0, logits=False, reduce=True):
    x = inputs.astype(jnp.float32)
    t = targets.astype(jnp.float32)
    if logits:
        bce = jnp.maximum(x, 0.0) - x * t + jnp.log1p(jnp.exp(-jnp.abs(x)))
    else:
        bce = -(t * jnp.maximum(jnp.log(x), -100.0)
                + (1.0 - t) * jnp.maximum(jnp.log(1.0 - x), -100.0))
    pt = jnp.exp(-bce)
    fl = alpha * (1.0 - pt) ** gamma * bce
    return jnp.mean(fl) if reduce else fl


if __name__ == "__main__":
    key = jax.random.PRNGKey(0)
    k1, k2, k3, k4 = jax.random.split(key, 4)

    # Module-default path (logits=False) expects probabilities in (0, 1).
    x = jax.random.uniform(k1, (2, 4, 16, 16), jnp.float32, minval=0.01, maxval=0.99)
    t = (jax.random.uniform(k2, (2, 4, 16, 16), jnp.float32) > 0.5).astype(jnp.float32)

    loss = jax.block_until_ready(
        binary_focal_loss(x, t, alpha=0.5, gamma=4.0, logits=False, reduce=True))
    ref = _reference(x, t, alpha=0.5, gamma=4.0, logits=False, reduce=True)
    assert jnp.allclose(loss, ref, rtol=1e-5, atol=1e-6), (loss, ref)

    # Non-reduced path (elementwise output).
    fl_elem = jax.block_until_ready(binary_focal_loss(x, t, reduce=False))
    assert fl_elem.shape == x.shape
    assert jnp.allclose(fl_elem, _reference(x, t, reduce=False), rtol=1e-5, atol=1e-6)

    # Awkward size + logits=True: exercises the zero-loss sentinel padding path.
    xl = jax.random.normal(k3, (3, 5, 7, 11), jnp.float32)
    tl = (jax.random.uniform(k4, (3, 5, 7, 11), jnp.float32) > 0.5).astype(jnp.float32)
    loss_l = jax.block_until_ready(
        binary_focal_loss(xl, tl, alpha=0.5, gamma=4.0, logits=True, reduce=True))
    ref_l = _reference(xl, tl, alpha=0.5, gamma=4.0, logits=True, reduce=True)
    assert jnp.allclose(loss_l, ref_l, rtol=1e-5, atol=1e-6), (loss_l, ref_l)

    # Optional single-log fast path (targets here are hard {0,1}).
    loss_b = jax.block_until_ready(binary_focal_loss(x, t, binary_targets=True))
    assert jnp.allclose(loss_b, ref, rtol=1e-5, atol=1e-6), (loss_b, ref)

    print("KERNEL_OK")
</pallas_src>

<mosaic_0001>
module attributes {stable_mosaic.version = 11 : i64} {
  func.func @_focal_sum_kernel(%arg0: i32, %arg1: i32, %arg2: memref<16x128xf32, #tpu.memory_space<vmem>>, %arg3: memref<16x128xf32, #tpu.memory_space<vmem>>, %arg4: memref<8x128xf32, #tpu.memory_space<vmem>>) attributes {dimension_semantics = [#tpu.dimension_semantics<parallel>, #tpu.dimension_semantics<arbitrary>], iteration_bounds = array<i64: 1, 1>, scalar_prefetch = 0 : i64, scratch_operands = 0 : i64, tpu.core_type = #tpu.core_type<tc>, window_params = [{transform_indices = @transform_0, window_bounds = array<i64: 16, 128>}, {transform_indices = @transform_1, window_bounds = array<i64: 16, 128>}, {transform_indices = @transform_2, window_bounds = array<i64: 8, 128>}]} {
    %c0_i32 = arith.constant 0 : i32
    %0 = arith.cmpi eq, %arg1, %c0_i32 : i32
    %1 = arith.extui %0 : i1 to i32
    %c0_i32_0 = arith.constant 0 : i32
    %2 = arith.cmpi ne, %1, %c0_i32_0 : i32
    scf.if %2 {
      %cst_17 = arith.constant 0.000000e+00 : f32
      %36 = vector.broadcast %cst_17 : f32 to vector<8x128xf32>
      %c0_18 = arith.constant 0 : index
      %c0_19 = arith.constant 0 : index
      %37 = vector.load %arg4[%c0_18, %c0_19] : memref<8x128xf32, #tpu.memory_space<vmem>>, vector<8x128xf32>
      tpu.vector_store %arg4[%c0_18, %c0_19], %36 {strides = array<i32>} : memref<8x128xf32, #tpu.memory_space<vmem>>, vector<8x128xf32>,
    } else {
    }
    %c0 = arith.constant 0 : index
    %c0_1 = arith.constant 0 : index
    %3 = vector.load %arg2[%c0, %c0_1] : memref<16x128xf32, #tpu.memory_space<vmem>>, vector<16x128xf32>
    %c0_2 = arith.constant 0 : index
    %c0_3 = arith.constant 0 : index
    %4 = vector.load %arg3[%c0_2, %c0_3] : memref<16x128xf32, #tpu.memory_space<vmem>>, vector<16x128xf32>
    %5 = math.log %3 : vector<16x128xf32>
    %cst = arith.constant -1.000000e+02 : f32
    %6 = vector.broadcast %cst : f32 to vector<16x128xf32>
    %7 = arith.maximumf %5, %6 : vector<16x128xf32>
    %cst_4 = arith.constant 1.000000e+00 : f32
    %8 = vector.broadcast %cst_4 : f32 to vector<16x128xf32>
    %9 = arith.subf %8, %3 : vector<16x128xf32>
    %10 = math.log %9 : vector<16x128xf32>
    %cst_5 = arith.constant -1.000000e+02 : f32
    %11 = vector.broadcast %cst_5 : f32 to vector<16x128xf32>
    %12 = arith.maximumf %10, %11 : vector<16x128xf32>
    %13 = arith.mulf %4, %7 : vector<16x128xf32>
    %cst_6 = arith.constant 1.000000e+00 : f32
    %14 = vector.broadcast %cst_6 : f32 to vector<16x128xf32>
    %15 = arith.subf %14, %4 : vector<16x128xf32>
    %16 = arith.mulf %15, %12 : vector<16x128xf32>
    %17 = arith.addf %13, %16 : vector<16x128xf32>
    %cst_7 = arith.constant 0.000000e+00 : f32
    %18 = vector.broadcast %cst_7 : f32 to vector<16x128xf32>
    %19 = arith.subf %18, %17 : vector<16x128xf32>
    %cst_8 = arith.constant 0.000000e+00 : f32
    %20 = vector.broadcast %cst_8 : f32 to vector<16x128xf32>
    %21 = arith.subf %20, %19 : vector<16x128xf32>
    %22 = math.exp %21 : vector<16x128xf32>
    %cst_9 = arith.constant 1.000000e+00 : f32
    %23 = vector.broadcast %cst_9 : f32 to vector<16x128xf32>
    %24 = arith.subf %23, %22 : vector<16x128xf32>
    %25 = arith.mulf %24, %24 : vector<16x128xf32>
    %26 = arith.mulf %25, %25 : vector<16x128xf32>
    %cst_10 = arith.constant 5.000000e-01 : f32
    %27 = vector.broadcast %cst_10 : f32 to vector<16x128xf32>
    %28 = arith.mulf %27, %26 : vector<16x128xf32>
    %29 = arith.mulf %28, %19 : vector<16x128xf32>
    %30 = vector.shape_cast %29 : vector<16x128xf32> to vector<2x1x8x128xf32>
    %cst_11 = arith.constant dense<0.000000e+00> : vector<2x8x128xf32>
    %31 = vector.multi_reduction <add>, %30, %cst_11 [1] : vector<2x1x8x128xf32> to vector<2x8x128xf32>
    %c0_12 = arith.constant 0 : index
    %c0_13 = arith.constant 0 : index
    %32 = vector.load %arg4[%c0_12, %c0_13] : memref<8x128xf32, #tpu.memory_space<vmem>>, vector<8x128xf32>
    %cst_14 = arith.constant dense<0.000000e+00> : vector<8x128xf32>
    %33 = vector.multi_reduction <add>, %31, %cst_14 [0] : vector<2x8x128xf32> to vector<8x128xf32>
    %34 = arith.addf %32, %33 : vector<8x128xf32>
    %c0_15 = arith.constant 0 : index
    %c0_16 = arith.constant 0 : index
    %35 = vector.load %arg4[%c0_15, %c0_16] : memref<8x128xf32, #tpu.memory_space<vmem>>, vector<8x128xf32>
    tpu.vector_store %arg4[%c0_15, %c0_16], %34 {strides = array<i32>} : memref<8x128xf32, #tpu.memory_space<vmem>>, vector<8x128xf32>,
    return
  }
  func.func @transform_0(%arg0: i32, %arg1: i32) -> (i32, i32) {
    %c1_i32 = arith.constant 1 : i32
    %0 = arith.muli %arg0, %c1_i32 : i32
    %1 = arith.addi %0, %arg1 : i32
    %c0_i32 = arith.constant 0 : i32
    %c0_i32_0 = arith.constant 0 : i32
    return %1, %c0_i32 : i32, i32
  }
  func.func @transform_1(%arg0: i32, %arg1: i32) -> (i32, i32) {
    %c1_i32 = arith.constant 1 : i32
    %0 = arith.muli %arg0, %c1_i32 : i32
    %1 = arith.addi %0, %arg1 : i32
    %c0_i32 = arith.constant 0 : i32
    %c0_i32_0 = arith.constant 0 : i32
    return %1, %c0_i32 : i32, i32
  }
  func.func @transform_2(%arg0: i32, %arg1: i32) -> (i32, i32) {
    %c0_i32 = arith.constant 0 : i32
    %c0_i32_0 = arith.constant 0 : i32
    return %arg0, %c0_i32 : i32, i32
  }
}

</mosaic_0001>

<bundles_post_ra>
// kernel: tpu_custom_call.1
= control target key start
LH: loop header
LB: loop body
LE: loop exit
PB: predicated region body
PF: predicated region fallthrough
CT: control target
= control target key end

     0   :  { %7 = vsyncpa [#allocation3], 0  ;;  %s236_s0 = inlined_call_operand.hbm [shape: f32[16,128], index: 0, kind: input, shape index: {}]   ;;  %s237_s1 = inlined_call_operand.hbm [shape: f32[16,128], index: 1, kind: input, shape index: {}]   ;;  %s238_s2 = inlined_call_operand.hbm [shape: f32[8,128], index: 2, kind: output, shape index: {}]  }
   0x1   :  { %8 = vsyncpa [#allocation6], 0 }
   0x2   :  { %9 = vsyncpa [#allocation4], 0  ;;  %s207_s9 = smov [#allocation2]  }
   0x3   :  { %s19_s10 = sshll.u32 %s207_s9, 4  ;;  %s20_s10 = int_to_ptr.vmem [resolvable:$true] %s19_s10 }
   0x4   :  { %s149_s11 = scalar_lea.vmem %s20_s10, 256  ;;  %p154_p1 = scmp.lt.s32.totalorder %s20_s10, %s20_s10 }
   0x5   :  { %p150_p0 = scmp.ne.s32.totalorder %s20_s10, %s149_s11  ;;  %p155_p2 = scmp.lt.s32.totalorder %s149_s11, %s149_s11 }
   0x7   :  { %p156_p3 = por %p155_p2, %p154_p1 }
   0x9   :  { %p157_p4 = pnand %p156_p3, %p150_p0 }
   0xb   :  { %160 = shalt.err (!%p157_p4)
}
   0xc   :  { %s208_s12 = smov 128   ;;  %s209_s13 = smov 8  }
   0xd   :  { %25 = dma.hbm_to_vmem [thread:$0]  %s236_s0, 256, %s20_s10, [#allocation3], %s208_s12, %s208_s12, %s209_s13  }
   0xe   :  { %s210_s16 = smov [#allocation5]  }
   0xf   :  { %s35_s17 = sshll.u32 %s210_s16, 4  ;;  %s36_s17 = int_to_ptr.vmem [resolvable:$true] %s35_s17 }
  0x10   :  { %s169_s18 = scalar_lea.vmem %s36_s17, 256  ;;  %p174_p6 = scmp.lt.s32.totalorder %s36_s17, %s36_s17 }
  0x11   :  { %p170_p5 = scmp.ne.s32.totalorder %s36_s17, %s169_s18  ;;  %p175_p7 = scmp.lt.s32.totalorder %s169_s18, %s169_s18 }
  0x13   :  { %p176_p8 = por %p175_p7, %p174_p6 }
  0x15   :  { %p177_p9 = pnand %p176_p8, %p170_p5 }
  0x17   :  { %180 = shalt.err (!%p177_p9)
}
  0x18   :  { %41 = dma.hbm_to_vmem [thread:$0]  %s237_s1, 256, %s36_s17, [#allocation6], %s208_s12, %s208_s12, %s209_s13  }
  0x19   :  { %201 = dma.done.wait [#allocation3], 256  }
  0x1a   :  { %202 = vsyncadd [#allocation3], 4294967040 }
  0x1b   :  { %203 = dma.done.wait [#allocation6], 256  }
  0x1c   :  { %204 = vsyncadd [#allocation6], 4294967040  ;;  %v57_v0 = vld [vmem:[#allocation2] sm:$0xff]  ;;  %v58_v1 = vld [vmem:[#allocation2 + $0x8] sm:$0xff]  ;;  %s211_s0 = smov [#allocation7]  }
  0x1d   :  { %129 = vlog2.f32 %v57_v0  ;;  %v67_v2 = vsub.f32 1.0, %v57_v0  ;;  %v68_v3 = vsub.f32 1.0, %v58_v1  ;;  %v59_v5 = vld [vmem:[#allocation5] sm:$0xff]  ;;  %v60_v7 = vld [vmem:[#allocation5 + $0x8] sm:$0xff]  ;;  %s113_s1 = sshll.u32 %s211_s0, 4  ;;  %s114_s1 = int_to_ptr.vmem [resolvable:$true] %s113_s1 }
  0x1e   :  { %131 = vlog2.f32 %v58_v1  ;;  %v77_v14 = vsub.f32 1.0, %v59_v5  ;;  %v78_v17 = vsub.f32 1.0, %v60_v7  ;;  %s181_s21 = scalar_lea.vmem %s114_s1, 128  ;;  %p186_p11 = scmp.lt.s32.totalorder %s114_s1, %s114_s1 }
  0x1f   :  { %133 = vlog2.f32 %v67_v2  ;;  %p182_p10 = scmp.ne.s32.totalorder %s114_s1, %s181_s21  ;;  %p187_p12 = scmp.lt.s32.totalorder %s181_s21, %s181_s21 }
  0x20   :  { %135 = vlog2.f32 %v68_v3 }
  0x21   :  { %p188_p13 = por %p187_p12, %p186_p11 }
  0x23   :  { %p189_p0 = pnand %p188_p13, %p182_p10 }
  0x2a   :  { %v130_v4 = vpop.eup %129 }
  0x2b   :  { %v132_v6 = vpop.eup %131  ;;  %v62_v8 = vmul.f32 0.6931472, %v130_v4 }
  0x2c   :  { %v134_v9 = vpop.eup %133  ;;  %v64_v10 = vmul.f32 0.6931472, %v132_v6 }
  0x2d   :  { %v136_v11 = vpop.eup %135  ;;  %v65_v12 = vmax.f32 %v62_v8, -100.0  ;;  %v70_v13 = vmul.f32 0.6931472, %v134_v9 }
  0x2e   :  { %v66_v15 = vmax.f32 %v64_v10, -100.0  ;;  %v72_v16 = vmul.f32 0.6931472, %v136_v11 }
  0x2f   :  { %v73_v18 = vmax.f32 %v70_v13, -100.0  ;;  %v75_v19 = vmul.f32 %v65_v12, %v59_v5 }
  0x30   :  { %v74_v20 = vmax.f32 %v72_v16, -100.0  ;;  %v76_v21 = vmul.f32 %v66_v15, %v60_v7 }
  0x31   :  { %v79_v22 = vmul.f32 %v77_v14, %v73_v18 }
  0x32   :  { %v80_v23 = vmul.f32 %v78_v17, %v74_v20 }
  0x33   :  { %v81_v24 = vadd.f32 %v79_v22, %v75_v19 }
  0x34   :  { %v82_v25 = vadd.f32 %v80_v23, %v76_v21 }
  0x35   :  { %v83_v26 = vsub.f32 0.0, %v81_v24 }
  0x36   :  { %v84_v27 = vsub.f32 0.0, %v82_v25 }
  0x37   :  { %v85_v28 = vsub.f32 0.0, %v83_v26 }
  0x38   :  { %v86_v29 = vsub.f32 0.0, %v84_v27 }
  0x39   :  { %v87_v30 = vmul.f32 1.442695, %v85_v28 }
  0x3a   :  { %v89_v31 = vmul.f32 1.442695, %v86_v29 }
  0x3b   :  { %137 = vpow2.f32 %v87_v30 }
  0x3c   :  { %139 = vpow2.f32 %v89_v31 }
  0x48   :  { %v138_v32 = vpop.eup %137 }
  0x49   :  { %v140_v33 = vpop.eup %139  ;;  %v91_v34 = vsub.f32 1.0, %v138_v32 }
  0x4a   :  { %v92_v35 = vsub.f32 1.0, %v140_v33 }
  0x4b   :  { %v93_v36 = vmul.f32 %v91_v34, %v91_v34 }
  0x4c   :  { %v94_v37 = vmul.f32 %v92_v35, %v92_v35 }
  0x4d   :  { %v95_v38 = vmul.f32 %v93_v36, %v93_v36 }
  0x4e   :  { %v96_v39 = vmul.f32 %v94_v37, %v94_v37 }
  0x4f   :  { %v97_v40 = vmul.f32 0.5, %v95_v38 }
  0x50   :  { %v98_v41 = vmul.f32 0.5, %v96_v39 }
  0x51   :  { %v99_v42 = vmul.f32 %v97_v40, %v83_v26 }
  0x52   :  { %v100_v43 = vmul.f32 %v98_v41, %v84_v27 }
  0x54   :  { %v104_v44 = vadd.f32 %v100_v43, %v99_v42 }
  0x56   :  { %106 = vst [vmem:[#allocation7] sm:$0xff] %v104_v44 }
  0x57   :  { %192 = shalt.err (!%p189_p0)
}
  0x58   :  { %116 = dma.vmem_to_hbm [thread:$0]  %s114_s1, 128, %s238_s2, [#allocation4]  }
  0x59   :  { %205 = dma.done.wait [#allocation4], 128  }
  0x5a   :  { %206 = vsyncadd [#allocation4], 4294967168 }
  0x5b   :  { %120 = vsyncpa [#allocation3], 1 }
  0x5c   :  { %121 = vsyncpa [#allocation6], 1 }
  0x5d   :  { %122 = vsyncpa [#allocation4], 1 }

</bundles_post_ra>
